<compile_context>
chip_gen: v7x
topology: tpu7x:2x2x1
jax: 0.10.0
libtpu: 0.0.40
codegen_flags: <defaults>
</compile_context>

<pallas_src>
import functools

import jax
import jax.numpy as jnp
from jax import lax
from jax.experimental import pallas as pl
from jax.experimental.pallas import tpu as pltpu


def _tnorm_kernel(x_ref, gamma_ref, beta_ref, s_ref, st_ref,
                  o_ref, mean_ref, var_ref, *,
                  inv_count, n_total, nt_total, eps):
    # x_ref / o_ref : (B, tc, K) block, K = G*T fused (node, time) lanes
    # gamma_ref / beta_ref / mean_ref / var_ref : (tc, G) block
    # s_ref : (K, G) 0/1 selector, st_ref : (G, K) its transpose
    B = x_ref.shape[0]
    tc = x_ref.shape[1]
    K = x_ref.shape[2]
    G = gamma_ref.shape[1]

    # ---- pass 1: fused sum / sum-of-squares over the batch axis (f32) ----
    zeros = jnp.zeros((tc, K), jnp.float32)

    def stats_body(b, carry):
        s1, s2 = carry
        xb = x_ref[b].astype(jnp.float32)                     # (tc, K)
        return s1 + xb, s2 + xb * xb

    s1, s2 = lax.fori_loop(0, B, stats_body, (zeros, zeros))

    # Ragged last lane tile: zero lanes past the real N*T extent so the 0/1
    # selector matmul below cannot pick up inf/nan garbage (0 * inf = nan).
    if nt_total % K != 0:
        k0 = pl.program_id(1) * K
        col = k0 + lax.broadcasted_iota(jnp.int32, (tc, K), 1)
        lane_ok = col < nt_total
        s1 = jnp.where(lane_ok, s1, 0.0)
        s2 = jnp.where(lane_ok, s2, 0.0)

    # ---- per-(channel, node) statistics: group-of-T lane reduction on the
    # otherwise idle MXU; variance fused as E[x^2] - E[x]^2 (f32 accumulation)
    sel = s_ref[...]                                          # (K, G)
    g1 = jnp.dot(s1, sel, preferred_element_type=jnp.float32)  # (tc, G)
    g2 = jnp.dot(s2, sel, preferred_element_type=jnp.float32)

    mean = g1 * inv_count
    var = jnp.maximum(g2 * inv_count - mean * mean, 0.0)
    mean_ref[...] = mean
    var_ref[...] = var

    # fold the affine into one scale/shift per (channel, node); rsqrt -> EUP
    scale_g = gamma_ref[...].astype(jnp.float32) * lax.rsqrt(var + eps)
    shift_g = beta_ref[...].astype(jnp.float32) - mean * scale_g

    # Ragged last node tile: out-of-range gamma/beta reads may be junk; zero
    # those groups so the broadcast matmul stays finite for the real lanes.
    if n_total % G != 0:
        g0 = pl.program_id(1) * G
        gcol = g0 + lax.broadcasted_iota(jnp.int32, (tc, G), 1)
        grp_ok = gcol < n_total
        scale_g = jnp.where(grp_ok, scale_g, 0.0)
        shift_g = jnp.where(grp_ok, shift_g, 0.0)

    # broadcast scale/shift back to the T lanes of each node (tiny MXU matmul)
    sel_t = st_ref[...]                                       # (G, K)
    scale_e = jnp.dot(scale_g, sel_t, preferred_element_type=jnp.float32)
    shift_e = jnp.dot(shift_g, sel_t, preferred_element_type=jnp.float32)

    # ---- pass 2: normalize (2 VPU ops/element, lane-dense unmasked stores) -
    def norm_body(b, carry):
        xb = x_ref[b].astype(jnp.float32)
        o_ref[b] = (xb * scale_e + shift_e).astype(o_ref.dtype)
        return carry

    lax.fori_loop(0, B, norm_body, 0)


def tnorm_forward(x, gamma, beta, *, eps=1e-5,
                  target_block_bytes=6 * 1024 * 1024,
                  vmem_limit_bytes=64 * 1024 * 1024):
    """x: (B, C, N, T); gamma/beta: (1, C, N, 1).

    Returns (out, mean, var): out has shape (B, C, N, T); mean/var are the
    biased batch statistics with shape (1, C, N, 1) (for the running-stats
    EMA, applied in plain JAX by the caller if desired).
    """
    B, C, N, T = x.shape
    NT = N * T
    itemsize = jnp.dtype(x.dtype).itemsize

    # HBM stays in the native order: only free dim-merging reshapes below.
    x3 = x.reshape(B, C, NT)
    g2 = gamma.reshape(C, N)
    b2 = beta.reshape(C, N)

    # Lane tile over the fused (node, time) axis: whole node groups of T
    # lanes; 128 node groups (=> lane width multiple of 128) unless N small.
    G = N if N <= 128 else 128
    tile_nt = G * T
    num_n = pl.cdiv(N, G)

    # Channel tile: largest multiple of 8 (or all of C) near the byte target.
    per_c_bytes = B * tile_nt * itemsize
    tc = max(1, target_block_bytes // per_c_bytes)
    if tc >= C:
        tc = C
    else:
        tc = max(8, (tc // 8) * 8)
        tc = min(tc, C)
    num_c = pl.cdiv(C, tc)

    # Prefer >= 4 grid steps (>= 2 per TensorCore on v7x megacore) when the
    # blocks are big enough that double-buffered pipelining matters.
    while num_c * num_n < 4 and tc > 8 and B * tc * tile_nt * itemsize > (1 << 20):
        tc = ((tc // 2 + 7) // 8) * 8
        num_c = pl.cdiv(C, tc)

    # 0/1 selector mapping the tile's K = G*T lanes to its G node groups (and
    # back); lets the group reduction / broadcast run on the idle MXU.
    grp = jnp.arange(tile_nt, dtype=jnp.int32) // T
    sel = (grp[:, None] == jnp.arange(G, dtype=jnp.int32)[None, :]).astype(jnp.float32)
    sel_t = sel.T

    kernel = functools.partial(
        _tnorm_kernel,
        inv_count=1.0 / (B * T), n_total=N, nt_total=NT, eps=eps)

    cost = pl.CostEstimate(
        flops=8 * x.size + 8 * C * NT * G,
        transcendentals=C * N,
        bytes_accessed=2 * x.size * itemsize + 2 * sel.size * 4 + 6 * C * N * 4,
    )

    out3, mean, var = pl.pallas_call(
        kernel,
        out_shape=(
            jax.ShapeDtypeStruct((B, C, NT), x.dtype),
            jax.ShapeDtypeStruct((C, N), jnp.float32),
            jax.ShapeDtypeStruct((C, N), jnp.float32),
        ),
        grid=(num_c, num_n),
        in_specs=[
            pl.BlockSpec((B, tc, tile_nt), lambda ci, ni: (0, ci, ni)),
            pl.BlockSpec((tc, G), lambda ci, ni: (ci, ni)),
            pl.BlockSpec((tc, G), lambda ci, ni: (ci, ni)),
            pl.BlockSpec((tile_nt, G), lambda ci, ni: (0, 0)),
            pl.BlockSpec((G, tile_nt), lambda ci, ni: (0, 0)),
        ],
        out_specs=(
            pl.BlockSpec((B, tc, tile_nt), lambda ci, ni: (0, ci, ni)),
            pl.BlockSpec((tc, G), lambda ci, ni: (ci, ni)),
            pl.BlockSpec((tc, G), lambda ci, ni: (ci, ni)),
        ),
        compiler_params=pltpu.CompilerParams(
            dimension_semantics=("parallel", "parallel"),
            vmem_limit_bytes=vmem_limit_bytes,
        ),
        cost_estimate=cost,
    )(x3, g2, b2, sel, sel_t)

    out = out3.reshape(B, C, N, T)
    mean = mean.reshape(1, C, N, 1)
    var = var.reshape(1, C, N, 1)
    return out, mean, var


def tnorm_reference(x, gamma, beta):
    x32 = x.astype(jnp.float32)
    mean = jnp.mean(x32, axis=(0, 3), keepdims=True)
    var = jnp.var(x32, axis=(0, 3), keepdims=True)  # ddof=0 == unbiased=False
    x_norm = (x32 - mean) / jnp.sqrt(var + 1e-5)
    return (x_norm * gamma + beta).astype(x.dtype)


if __name__ == "__main__":
    B, C, N, T = 2, 4, 16, 8

    key = jax.random.PRNGKey(0)
    kx, kg, kb = jax.random.split(key, 3)

    x = jax.random.normal(kx, (B, C, N, T), dtype=jnp.float32)
    # __init__ shapes: gamma/beta are (1, C, N, 1); use non-trivial values so
    # the affine path is actually exercised.
    gamma = 1.0 + 0.1 * jax.random.normal(kg, (1, C, N, 1), dtype=jnp.float32)
    beta = 0.1 * jax.random.normal(kb, (1, C, N, 1), dtype=jnp.float32)

    out, mean, var = tnorm_forward(x, gamma, beta)
    out = jax.block_until_ready(out)

    ref = tnorm_reference(x, gamma, beta)
    assert out.shape == (B, C, N, T)
    max_err = float(jnp.max(jnp.abs(out - ref)))
    assert jnp.allclose(out, ref, atol=1e-4, rtol=1e-4), max_err

    # batch statistics (what the module would feed into the running-stats EMA)
    ref_mean = jnp.mean(x, axis=(0, 3), keepdims=True)
    ref_var = jnp.var(x, axis=(0, 3), keepdims=True)
    assert jnp.allclose(mean, ref_mean, atol=1e-4, rtol=1e-4)
    assert jnp.allclose(var, ref_var, atol=1e-4, rtol=1e-4)

    print("KERNEL_OK")
</pallas_src>

<mosaic_0001>
module attributes {stable_mosaic.version = 11 : i64} {
  func.func @_tnorm_kernel(%arg0: i32, %arg1: i32, %arg2: memref<2x4x128xf32, #tpu.memory_space<vmem>>, %arg3: memref<4x16xf32, #tpu.memory_space<vmem>>, %arg4: memref<4x16xf32, #tpu.memory_space<vmem>>, %arg5: memref<128x16xf32, #tpu.memory_space<vmem>>, %arg6: memref<16x128xf32, #tpu.memory_space<vmem>>, %arg7: memref<2x4x128xf32, #tpu.memory_space<vmem>>, %arg8: memref<4x16xf32, #tpu.memory_space<vmem>>, %arg9: memref<4x16xf32, #tpu.memory_space<vmem>>) attributes {dimension_semantics = [#tpu.dimension_semantics<parallel>, #tpu.dimension_semantics<parallel>], iteration_bounds = array<i64: 1, 1>, scalar_prefetch = 0 : i64, scratch_operands = 0 : i64, tpu.core_type = #tpu.core_type<tc>, window_params = [{transform_indices = @transform_0, window_bounds = array<i64: 2, 4, 128>}, {transform_indices = @transform_1, window_bounds = array<i64: 4, 16>}, {transform_indices = @transform_2, window_bounds = array<i64: 4, 16>}, {pipeline_mode = #tpu.pipeline_mode<synchronous>, transform_indices = @transform_3, window_bounds = array<i64: 128, 16>}, {pipeline_mode = #tpu.pipeline_mode<synchronous>, transform_indices = @transform_4, window_bounds = array<i64: 16, 128>}, {transform_indices = @transform_5, window_bounds = array<i64: 2, 4, 128>}, {transform_indices = @transform_6, window_bounds = array<i64: 4, 16>}, {transform_indices = @transform_7, window_bounds = array<i64: 4, 16>}]} {
    %cst = arith.constant 0.000000e+00 : f32
    %0 = vector.broadcast %cst : f32 to vector<4x128xf32>
    %c0_i32 = arith.constant 0 : i32
    %c2_i32 = arith.constant 2 : i32
    %1 = arith.addi %c0_i32, %c2_i32 : i32
    %c1_i32 = arith.constant 1 : i32
    %2:2 = scf.for %arg10 = %c0_i32 to %1 step %c1_i32 iter_args(%arg11 = %0, %arg12 = %0) -> (vector<4x128xf32>, vector<4x128xf32>)  : i32 {
      %28 = arith.index_cast %arg10 : i32 to index
      %c0_24 = arith.constant 0 : index
      %c0_25 = arith.constant 0 : index
      %29 = vector.load %arg2[%28, %c0_24, %c0_25] : memref<2x4x128xf32, #tpu.memory_space<vmem>>, vector<1x4x128xf32>
      %30 = vector.shape_cast %29 : vector<1x4x128xf32> to vector<4x128xf32>
      %31 = arith.addf %arg11, %30 : vector<4x128xf32>
      %32 = arith.mulf %30, %30 : vector<4x128xf32>
      %33 = arith.addf %arg12, %32 : vector<4x128xf32>
      scf.yield %31, %33 : vector<4x128xf32>, vector<4x128xf32>
    }
    %c2_i32_0 = arith.constant 2 : i32
    %c0 = arith.constant 0 : index
    %c0_1 = arith.constant 0 : index
    %3 = vector.load %arg5[%c0, %c0_1] : memref<128x16xf32, #tpu.memory_space<vmem>>, vector<128x16xf32>
    %cst_2 = arith.constant dense<0.000000e+00> : vector<4x16xf32>
    %4 = tpu.matmul %2#0, %3, %cst_2 {dimension_numbers = #tpu.dot_dimension_numbers<[1], [0], [0], [1], [0, 0, 1, 1], [], []>} : vector<4x128xf32>, vector<128x16xf32>, vector<4x16xf32> -> vector<4x16xf32>
    %cst_3 = arith.constant dense<0.000000e+00> : vector<4x16xf32>
    %5 = tpu.matmul %2#1, %3, %cst_3 {dimension_numbers = #tpu.dot_dimension_numbers<[1], [0], [0], [1], [0, 0, 1, 1], [], []>} : vector<4x128xf32>, vector<128x16xf32>, vector<4x16xf32> -> vector<4x16xf32>
    %cst_4 = arith.constant 6.250000e-02 : f32
    %6 = vector.broadcast %cst_4 : f32 to vector<4x16xf32>
    %7 = arith.mulf %4, %6 : vector<4x16xf32>
    %cst_5 = arith.constant 6.250000e-02 : f32
    %8 = vector.broadcast %cst_5 : f32 to vector<4x16xf32>
    %9 = arith.mulf %5, %8 : vector<4x16xf32>
    %10 = arith.mulf %7, %7 : vector<4x16xf32>
    %11 = arith.subf %9, %10 : vector<4x16xf32>
    %cst_6 = arith.constant 0.000000e+00 : f32
    %12 = vector.broadcast %cst_6 : f32 to vector<4x16xf32>
    %13 = arith.maximumf %11, %12 : vector<4x16xf32>
    %c0_7 = arith.constant 0 : index
    %c0_8 = arith.constant 0 : index
    %14 = vector.load %arg8[%c0_7, %c0_8] : memref<4x16xf32, #tpu.memory_space<vmem>>, vector<4x16xf32>
    tpu.vector_store %arg8[%c0_7, %c0_8], %7 {strides = array<i32>} : memref<4x16xf32, #tpu.memory_space<vmem>>, vector<4x16xf32>,
    %c0_9 = arith.constant 0 : index
    %c0_10 = arith.constant 0 : index
    %15 = vector.load %arg9[%c0_9, %c0_10] : memref<4x16xf32, #tpu.memory_space<vmem>>, vector<4x16xf32>
    tpu.vector_store %arg9[%c0_9, %c0_10], %13 {strides = array<i32>} : memref<4x16xf32, #tpu.memory_space<vmem>>, vector<4x16xf32>,
    %c0_11 = arith.constant 0 : index
    %c0_12 = arith.constant 0 : index
    %16 = vector.load %arg3[%c0_11, %c0_12] : memref<4x16xf32, #tpu.memory_space<vmem>>, vector<4x16xf32>
    %cst_13 = arith.constant 9.99999974E-6 : f32
    %17 = vector.broadcast %cst_13 : f32 to vector<4x16xf32>
    %18 = arith.addf %13, %17 : vector<4x16xf32>
    %19 = math.rsqrt %18 : vector<4x16xf32>
    %20 = arith.mulf %16, %19 : vector<4x16xf32>
    %c0_14 = arith.constant 0 : index
    %c0_15 = arith.constant 0 : index
    %21 = vector.load %arg4[%c0_14, %c0_15] : memref<4x16xf32, #tpu.memory_space<vmem>>, vector<4x16xf32>
    %22 = arith.mulf %7, %20 : vector<4x16xf32>
    %23 = arith.subf %21, %22 : vector<4x16xf32>
    %c0_16 = arith.constant 0 : index
    %c0_17 = arith.constant 0 : index
    %24 = vector.load %arg6[%c0_16, %c0_17] : memref<16x128xf32, #tpu.memory_space<vmem>>, vector<16x128xf32>
    %cst_18 = arith.constant dense<0.000000e+00> : vector<4x128xf32>
    %25 = tpu.matmul %20, %24, %cst_18 {dimension_numbers = #tpu.dot_dimension_numbers<[1], [0], [0], [1], [0, 0, 1, 1], [], []>} : vector<4x16xf32>, vector<16x128xf32>, vector<4x128xf32> -> vector<4x128xf32>
    %cst_19 = arith.constant dense<0.000000e+00> : vector<4x128xf32>
    %26 = tpu.matmul %23, %24, %cst_19 {dimension_numbers = #tpu.dot_dimension_numbers<[1], [0], [0], [1], [0, 0, 1, 1], [], []>} : vector<4x16xf32>, vector<16x128xf32>, vector<4x128xf32> -> vector<4x128xf32>
    %c0_i32_20 = arith.constant 0 : i32
    %c2_i32_21 = arith.constant 2 : i32
    %27 = arith.addi %c0_i32_20, %c2_i32_21 : i32
    %c1_i32_22 = arith.constant 1 : i32
    scf.for %arg10 = %c0_i32_20 to %27 step %c1_i32_22  : i32 {
      %28 = arith.index_cast %arg10 : i32 to index
      %c0_24 = arith.constant 0 : index
      %c0_25 = arith.constant 0 : index
      %29 = vector.load %arg2[%28, %c0_24, %c0_25] : memref<2x4x128xf32, #tpu.memory_space<vmem>>, vector<1x4x128xf32>
      %30 = vector.shape_cast %29 : vector<1x4x128xf32> to vector<4x128xf32>
      %31 = arith.mulf %30, %25 : vector<4x128xf32>
      %32 = arith.addf %31, %26 : vector<4x128xf32>
      %33 = arith.index_cast %arg10 : i32 to index
      %c0_26 = arith.constant 0 : index
      %c0_27 = arith.constant 0 : index
      %34 = vector.load %arg7[%33, %c0_26, %c0_27] : memref<2x4x128xf32, #tpu.memory_space<vmem>>, vector<1x4x128xf32>
      %35 = vector.shape_cast %34 : vector<1x4x128xf32> to vector<4x128xf32>
      %36 = vector.shape_cast %32 : vector<4x128xf32> to vector<1x4x128xf32>
      tpu.vector_store %arg7[%33, %c0_26, %c0_27], %36 {strides = array<i32>} : memref<2x4x128xf32, #tpu.memory_space<vmem>>, vector<1x4x128xf32>,
    }
    %c2_i32_23 = arith.constant 2 : i32
    return
  }
  func.func @transform_0(%arg0: i32, %arg1: i32) -> (i32, i32, i32) {
    %c0_i32 = arith.constant 0 : i32
    %c0_i32_0 = arith.constant 0 : i32
    return %c0_i32, %arg0, %arg1 : i32, i32, i32
  }
  func.func @transform_1(%arg0: i32, %arg1: i32) -> (i32, i32) {
    %c0_i32 = arith.constant 0 : i32
    return %arg0, %arg1 : i32, i32
  }
  func.func @transform_2(%arg0: i32, %arg1: i32) -> (i32, i32) {
    %c0_i32 = arith.constant 0 : i32
    return %arg0, %arg1 : i32, i32
  }
  func.func @transform_3(%arg0: i32, %arg1: i32) -> (i32, i32) {
    %c0_i32 = arith.constant 0 : i32
    %c0_i32_0 = arith.constant 0 : i32
    %c0_i32_1 = arith.constant 0 : i32
    return %c0_i32, %c0_i32_0 : i32, i32
  }
  func.func @transform_4(%arg0: i32, %arg1: i32) -> (i32, i32) {
    %c0_i32 = arith.constant 0 : i32
    %c0_i32_0 = arith.constant 0 : i32
    %c0_i32_1 = arith.constant 0 : i32
    return %c0_i32, %c0_i32_0 : i32, i32
  }
  func.func @transform_5(%arg0: i32, %arg1: i32) -> (i32, i32, i32) {
    %c0_i32 = arith.constant 0 : i32
    %c0_i32_0 = arith.constant 0 : i32
    return %c0_i32, %arg0, %arg1 : i32, i32, i32
  }
  func.func @transform_6(%arg0: i32, %arg1: i32) -> (i32, i32) {
    %c0_i32 = arith.constant 0 : i32
    return %arg0, %arg1 : i32, i32
  }
  func.func @transform_7(%arg0: i32, %arg1: i32) -> (i32, i32) {
    %c0_i32 = arith.constant 0 : i32
    return %arg0, %arg1 : i32, i32
  }
}

</mosaic_0001>

<bundles_post_ra>
// kernel: tpu_custom_call.1
= control target key start
LH: loop header
LB: loop body
LE: loop exit
PB: predicated region body
PF: predicated region fallthrough
CT: control target
= control target key end

     0   :  { %13 = vsyncpa [#allocation3], 0  ;;  %s1142_s0 = inlined_call_operand.hbm [shape: f32[2,4,128], index: 0, kind: input, shape index: {}]   ;;  %s1143_s1 = inlined_call_operand.hbm [shape: f32[4,16], index: 1, kind: input, shape index: {}]   ;;  %s1144_s2 = inlined_call_operand.hbm [shape: f32[4,16], index: 2, kind: input, shape index: {}]   ;;  %s1145_s3 = inlined_call_operand.hbm [shape: f32[128,16], index: 3, kind: input, shape index: {}]   ;;  %s1146_s4 = inlined_call_operand.hbm [shape: f32[16,128], index: 4, kind: input, shape index: {}]   ;;  %s1147_s5 = inlined_call_operand.hbm [shape: f32[2,4,128], index: 5, kind: output, shape index: {0}]   ;;  %s1148_s6 = inlined_call_operand.hbm [shape: f32[4,16], index: 6, kind: output, shape index: {1}]   ;;  %s1149_s7 = inlined_call_operand.hbm [shape: f32[4,16], index: 7, kind: output, shape index: {2}]  }
   0x1   :  { %14 = vsyncpa [#allocation6], 0 }
   0x2   :  { %15 = vsyncpa [#allocation9], 0 }
   0x3   :  { %16 = vsyncpa [#allocation4], 0 }
   0x4   :  { %17 = vsyncpa [#allocation13], 0  ;;  %s953_s24 = smov [#allocation5]   ;;  %s954_s26 = smov [#allocation8]  }
   0x5   :  { %s36_s25 = sshll.u32 %s953_s24, 4  ;;  %s55_s27 = sshll.u32 %s954_s26, 4  ;;  %s37_s25 = int_to_ptr.vmem [resolvable:$true] %s36_s25  ;;  %s1008_s27 = int_to_ptr.vmem [resolvable:$true] %s55_s27 }
   0x6   :  { %s735_s30 = scalar_lea.hbm %s1143_s1, 64 }
   0x7   :  { %p736_p0 = scmp.ne.s32.totalorder %s1143_s1, %s735_s30  ;;  %p739_p1 = scmp.lt.u32.totalorder %s735_s30, %s1143_s1 }
   0x9   :  { %p741_p2 = pnand %p739_p1, %p736_p0 }
   0xb   :  { %744 = shalt.err (!%p741_p2)
}
   0xc   :  { %s745_s12 = scalar_lea.vmem %s37_s25, 64  ;;  %p750_p4 = scmp.lt.s32.totalorder %s37_s25, %s37_s25 }
   0xd   :  { %p746_p3 = scmp.ne.s32.totalorder %s37_s25, %s745_s12  ;;  %p751_p5 = scmp.lt.s32.totalorder %s745_s12, %s745_s12 }
   0xf   :  { %p752_p6 = por %p751_p5, %p750_p4 }
  0x11   :  { %p753_p7 = pnand %p752_p6, %p746_p3 }
  0x13   :  { %756 = shalt.err (!%p753_p7)
}
  0x14   :  { %39 = dma.hbm_to_vmem [thread:$0]  %s1143_s1, 64, %s37_s25, [#allocation6]  }
  0x15   :  { %s757_s17 = scalar_lea.hbm %s1145_s3, 2048 }
  0x16   :  { %p758_p8 = scmp.ne.s32.totalorder %s1145_s3, %s757_s17  ;;  %p761_p9 = scmp.lt.u32.totalorder %s757_s17, %s1145_s3 }
  0x18   :  { %p763_p10 = pnand %p761_p9, %p758_p8 }
  0x1a   :  { %766 = shalt.err (!%p763_p10)
}
  0x1b   :  { %s767_s22 = scalar_lea.vmem %s1008_s27, 2048  ;;  %p772_p12 = scmp.lt.s32.totalorder %s1008_s27, %s1008_s27 }
  0x1c   :  { %p768_p11 = scmp.ne.s32.totalorder %s1008_s27, %s767_s22  ;;  %p773_p13 = scmp.lt.s32.totalorder %s767_s22, %s767_s22 }
  0x1e   :  { %p774_p0 = por %p773_p13, %p772_p12 }
  0x20   :  { %p775_p1 = pnand %p774_p0, %p768_p11 }
  0x22   :  { %778 = shalt.err (!%p775_p1)
}
  0x23   :  { %s955_s1 = smov 128   ;;  %s956_s23 = smov 8  }
  0x24   :  { %61 = dma.hbm_to_vmem [thread:$0]  %s1145_s3, 2048, %s1008_s27, [#allocation9], %s955_s1, %s955_s1, %s956_s23  }
  0x25   :  { %s957_s26 = smov [#allocation2]   ;;  %s779_s8 = scalar_lea.hbm %s1142_s0, 128 }
  0x26   :  { %s23_s28 = sshll.u32 %s957_s26, 4  ;;  %p780_p2 = scmp.ne.s32.totalorder %s1142_s0, %s779_s8  ;;  %s24_s28 = int_to_ptr.vmem [resolvable:$true] %s23_s28 }
  0x27   :  { %p783_p3 = scmp.lt.u32.totalorder %s779_s8, %s1142_s0 }
  0x29   :  { %p785_p4 = pnand %p783_p3, %p780_p2 }
  0x2b   :  { %788 = shalt.err (!%p785_p4)
}
  0x2c   :  { %s789_s13 = scalar_lea.vmem %s24_s28, 128  ;;  %p794_p6 = scmp.lt.s32.totalorder %s24_s28, %s24_s28 }
  0x2d   :  { %p790_p5 = scmp.ne.s32.totalorder %s24_s28, %s789_s13  ;;  %p795_p7 = scmp.lt.s32.totalorder %s789_s13, %s789_s13 }
  0x2f   :  { %p796_p8 = por %p795_p7, %p794_p6 }
  0x31   :  { %p797_p9 = pnand %p796_p8, %p790_p5 }
  0x33   :  { %800 = shalt.err (!%p797_p9)
}
  0x34   :  { %s958_s3 = smov 64   ;;  %s959_s27 = smov 4  }
  0x35   :  { %29 = dma.hbm_to_vmem [thread:$0]  %s1142_s0, 128, %s24_s28, [#allocation3], %s958_s3, %s958_s3, %s959_s27  }
  0x36   :  { %s960_s16 = smov [#allocation7]   ;;  %s961_s18 = smov [#allocation10]  }
  0x37   :  { %s46_s17 = sshll.u32 %s960_s16, 4  ;;  %s67_s19 = sshll.u32 %s961_s18, 4  ;;  %s47_s17 = int_to_ptr.vmem [resolvable:$true] %s46_s17  ;;  %s68_s19 = int_to_ptr.vmem [resolvable:$true] %s67_s19 }
  0x38   :  { %s801_s22 = scalar_lea.hbm %s1144_s2, 64 }
  0x39   :  { %p802_p10 = scmp.ne.s32.totalorder %s1144_s2, %s801_s22  ;;  %p805_p11 = scmp.lt.u32.totalorder %s801_s22, %s1144_s2 }
  0x3b   :  { %p807_p12 = pnand %p805_p11, %p802_p10 }
  0x3d   :  { %810 = shalt.err (!%p807_p12)
}
  0x3e   :  { %s811_s0 = scalar_lea.vmem %s47_s17, 64  ;;  %p816_p0 = scmp.lt.s32.totalorder %s47_s17, %s47_s17 }
  0x3f   :  { %p812_p13 = scmp.ne.s32.totalorder %s47_s17, %s811_s0  ;;  %p817_p1 = scmp.lt.s32.totalorder %s811_s0, %s811_s0 }
  0x41   :  { %p818_p2 = por %p817_p1, %p816_p0 }
  0x43   :  { %p819_p3 = pnand %p818_p2, %p812_p13 }
  0x45   :  { %822 = shalt.err (!%p819_p3)
}
  0x46   :  { %49 = dma.hbm_to_vmem [thread:$0]  %s1144_s2, 64, %s47_s17, [#allocation6]  }
  0x47   :  { %s823_s10 = scalar_lea.hbm %s1146_s4, 256 }
  0x48   :  { %p824_p4 = scmp.ne.s32.totalorder %s1146_s4, %s823_s10  ;;  %p827_p5 = scmp.lt.u32.totalorder %s823_s10, %s1146_s4 }
  0x4a   :  { %p829_p6 = pnand %p827_p5, %p824_p4 }
  0x4c   :  { %832 = shalt.err (!%p829_p6)
}
  0x4d   :  { %s833_s15 = scalar_lea.vmem %s68_s19, 256  ;;  %p838_p8 = scmp.lt.s32.totalorder %s68_s19, %s68_s19 }
  0x4e   :  { %p834_p7 = scmp.ne.s32.totalorder %s68_s19, %s833_s15  ;;  %p839_p9 = scmp.lt.s32.totalorder %s833_s15, %s833_s15 }
  0x50   :  { %p840_p10 = por %p839_p9, %p838_p8 }
  0x52   :  { %p841_p11 = pnand %p840_p10, %p834_p7 }
  0x54   :  { %844 = shalt.err (!%p841_p11)
}
  0x55   :  { %73 = dma.hbm_to_vmem [thread:$0]  %s1146_s4, 256, %s68_s19, [#allocation9], %s955_s1, %s955_s1, %s956_s23  }
  0x56   :  { %927 = dma.done.wait [#allocation3], 128  }
  0x57   :  { %928 = vsyncadd [#allocation3], 4294967168 }
  0x58   :  { %929 = dma.done.wait [#allocation6], 128  }
  0x59   :  { %930 = vsyncadd [#allocation6], 4294967168 }
  0x5a   :  { %931 = dma.done.wait [#allocation9], 2304  }
  0x5b   :  { %932 = vsyncadd [#allocation9], 4294964992  ;;  %v937_v0 = vmov 0.0   ;;  %v941_v1 = vmov 0.0   ;;  %s945_s17 = smov 0  }
  0x5c LB: > { %s504_s18 = sshll.u32 %s947_s17, 2  ;;  %s94_s17 = sadd.s32 1, %s947_s17   ;;  %s947_s17 = sphi %s945_s17, %s94_s17   ;;  %v943_v1 = vphi %v941_v1, %v942_v1   ;;  %v939_v0 = vphi %v937_v0, %v938_v0  }
  0x5d   : > { %s98_s20 = scalar_lea.vmem [#allocation2], %s504_s18  ;;  %p91_p12 = scmp.ge.s32.totalorder %s94_s17, 2  }
  0x5e   : > { %v99_v2 = vld [vmem:[%s98_s20] sm:$0xf]  ;;  %v103_v6 = vld [vmem:[#allocation8] sm:$0xff] (%p91_p12)  ;;  %v104_v7 = vld [vmem:[#allocation8 + $0x8] sm:$0xff] (%p91_p12)  ;;  %v962_v9 = vmov (%p91_p12), 0.0|0.0   ;;  %vm963_vm0 = vmmov (%p91_p12), 0  }
  0x5f   : > { %v1084_v1 = vadd.f32 %v943_v1, %v99_v2   ;;  %v101_v4 = vmul.f32 %v99_v2, %v99_v2  ;;  %93 = sbr.rel (!%p91_p12) target bundleno = 92 (0x5c), region = 93  ;;  %v105_v8 = vld [vmem:[#allocation8 + $0x10] sm:$0xff] (%p91_p12)  ;;  %632 = vmatprep.subr.bf16.mxu0 (%p91_p12), %v962_v9  ;;  %v633_v10 = vpack.c.bf16 (%p91_p12), %v104_v7, %v103_v6  ;;  %656 = vmatprep.subr.bf16.mxu1 (%p91_p12), %v962_v9  ;;  %v106_v11 = vld [vmem:[#allocation8 + $0x18] sm:$0xff] (%p91_p12)  ;;  %v964_v12 = vmov (%p91_p12), 0.0   ;;  %v107_v14 = vld [vmem:[#allocation8 + $0x20] sm:$0xff] (%p91_p12)  ;;  %s949_s4 = smov (%p91_p12), 0  }
  0x60   :  { %580 = vmatprep.mubr.msk.f32.mxu0 (%p91_p12), %vm963_vm0, %v964_v12  ;;  %615 = vmatprep.mubr.msk.f32.mxu1 (%p91_p12), %vm963_vm0, %v964_v12  ;;  %v636_v13 = vpack.c.bf16 (%p91_p12), %v106_v11, %v105_v8  ;;  %v108_v15 = vld [vmem:[#allocation8 + $0x28] sm:$0xff] (%p91_p12)  ;;  %v109_v17 = vld [vmem:[#allocation8 + $0x30] sm:$0xff] (%p91_p12)  ;;  %v110_v18 = vld [vmem:[#allocation8 + $0x38] sm:$0xff] (%p91_p12)  ;;  %vm264_vm1 = vcmask (%p91_p12), 125952   ;;  %vm276_vm2 = vcmask (%p91_p12), 130048  }
  0x61   : > { %v1150_v3 = vmov %v1084_v1  ;;  %v1086_v0 = vadd.f32 %v939_v0, %v101_v4   ;;  %634 = vmatpush3.bf16.msra.mxu0 (%p91_p12), %v633_v10  ;;  %658 = vmatpush3.bf16.msra.mxu1 (%p91_p12), %v633_v10  ;;  %v639_v16 = vpack.c.bf16 (%p91_p12), %v108_v15, %v107_v14  ;;  %v642_v19 = vpack.c.bf16 (%p91_p12), %v110_v18, %v109_v17  ;;  %v111_v20 = vld [vmem:[#allocation8 + $0x40] sm:$0xff] (%p91_p12)  ;;  %v112_v21 = vld [vmem:[#allocation8 + $0x48] sm:$0xff] (%p91_p12)  ;;  %v113_v23 = vld [vmem:[#allocation8 + $0x50] sm:$0xff] (%p91_p12) }
  0x62   : > { %v942_v1 = vmov %v1150_v3   ;;  %635 = vmatprep.subr.bf16.mxu0 (%p91_p12), %v962_v9  ;;  %659 = vmatprep.subr.bf16.mxu1 (%p91_p12), %v962_v9  ;;  %v645_v22 = vpack.c.bf16 (%p91_p12), %v112_v21, %v111_v20  ;;  %v114_v24 = vld [vmem:[#allocation8 + $0x58] sm:$0xff] (%p91_p12)  ;;  %v115_v26 = vld [vmem:[#allocation8 + $0x60] sm:$0xff] (%p91_p12)  ;;  %v116_v27 = vld [vmem:[#allocation8 + $0x68] sm:$0xff] (%p91_p12) }
  0x63   : > { %v1151_v5 = vmov %v1086_v0  ;;  %v648_v25 = vpack.c.bf16 (%p91_p12), %v114_v24, %v113_v23  ;;  %v651_v28 = vpack.c.bf16 (%p91_p12), %v116_v27, %v115_v26  ;;  %v117_v29 = vld [vmem:[#allocation8 + $0x70] sm:$0xff] (%p91_p12)  ;;  %v118_v30 = vld [vmem:[#allocation8 + $0x78] sm:$0xff] (%p91_p12)  ;;  %v274_v32 = vld [vmem:[#allocation10] sm:$0xff] (%p91_p12) }
  0x64   : > { %v938_v0 = vmov %v1151_v5   ;;  %v654_v31 = vpack.c.bf16 (%p91_p12), %v118_v30, %v117_v29  ;;  %v275_v33 = vld [vmem:[#allocation10 + $0x8] sm:$0xff] (%p91_p12)  ;;  %v267_v45 = vld [vmem:[#allocation5] sm:$0xf] (%p91_p12)  ;;  %v271_v48 = vld [vmem:[#allocation7] sm:$0xf] (%p91_p12) }
  0x65   :  { %637 = vmatpush3.bf16.msra.mxu0 (%p91_p12), %v636_v13  ;;  %661 = vmatpush3.bf16.msra.mxu1 (%p91_p12), %v636_v13  ;;  %v681_v34 = vpack.c.bf16 (%p91_p12), %v275_v33, %v274_v32 }
  0x66   :  { %638 = vmatprep.subr.bf16.mxu0 %v962_v9  ;;  %662 = vmatprep.subr.bf16.mxu1 %v962_v9 }
  0x69   :  { %640 = vmatpush3.bf16.msra.mxu0 %v639_v16  ;;  %664 = vmatpush3.bf16.msra.mxu1 %v639_v16 }
  0x6a   :  { %641 = vmatprep.subr.bf16.mxu0 %v962_v9  ;;  %665 = vmatprep.subr.bf16.mxu1 %v962_v9 }
  0x6d   :  { %643 = vmatpush3.bf16.msra.mxu0 %v642_v19  ;;  %667 = vmatpush3.bf16.msra.mxu1 %v642_v19 }
  0x6e   :  { %644 = vmatprep.subr.bf16.mxu0 %v962_v9  ;;  %668 = vmatprep.subr.bf16.mxu1 %v962_v9 }
  0x71   :  { %646 = vmatpush3.bf16.msra.mxu0 %v645_v22  ;;  %670 = vmatpush3.bf16.msra.mxu1 %v645_v22 }
  0x72   :  { %647 = vmatprep.subr.bf16.mxu0 %v962_v9  ;;  %671 = vmatprep.subr.bf16.mxu1 %v962_v9 }
  0x75   :  { %649 = vmatpush3.bf16.msra.mxu0 %v648_v25  ;;  %673 = vmatpush3.bf16.msra.mxu1 %v648_v25 }
  0x76   :  { %650 = vmatprep.subr.bf16.mxu0 %v962_v9  ;;  %674 = vmatprep.subr.bf16.mxu1 %v962_v9 }
  0x79   :  { %652 = vmatpush3.bf16.msra.mxu0 %v651_v28  ;;  %676 = vmatpush3.bf16.msra.mxu1 %v651_v28 }
  0x7a   :  { %653 = vmatprep.subr.bf16.mxu0 %v962_v9  ;;  %677 = vmatprep.subr.bf16.mxu1 %v962_v9 }
  0x7d   :  { %655 = vmatpush3.bf16.msra.mxu0 %v654_v31  ;;  %679 = vmatpush3.bf16.msra.mxu1 %v654_v31 }
  0x7e   :  { %680 = vmatprep.subr.bf16.mxu0 %v962_v9  ;;  %683 = vmatprep.subr.bf16.mxu1 %v962_v9 }
  0x80   :  { %581 = vmatmul.mubr.f32.vlgmr.msra.gmra.mrb[0].mxu0 %v1150_v3  ;;  %616 = vmatmul.mubr.f32.vlgmr.msra.gmra.mrb[0].mxu1 %v1151_v5 }
  0x81   :  { %622 = vmatprep.mubr.msk.f32.mxu0 %vm963_vm0, %v964_v12  ;;  %629 = vmatprep.mubr.msk.f32.mxu1 %vm963_vm0, %v964_v12 }
  0x82   :  { %682 = vmatpush3.bf16.msra.mxu0 %v681_v34  ;;  %685 = vmatpush3.bf16.msra.mxu1 %v681_v34 }
 0x153   :  { %v185_v35 = vpop.f32.mrb[0].mxu0  ;;  %v255_v36 = vpop.f32.mrb[0].mxu1 }
 0x154   :  { %v259_v37 = vmul.f32 0.0625, %v185_v35  ;;  %v582_v38 = vpop.f32.mrb[1].mxu0  ;;  %v260_v39 = vmul.f32 0.0625, %v255_v36  ;;  %v617_v40 = vpop.f32.mrb[1].mxu1 }
 0x156   :  { %265 = vst.msk [vmem:[#allocation12] sm:$0xf] %vm264_vm1, %v259_v37  ;;  %v261_v41 = vmul.f32 %v259_v37, %v259_v37 }
 0x158   :  { %v262_v42 = vsub.f32 %v260_v39, %v261_v41 }
 0x15a   :  { %v263_v43 = vmax.f32 %v262_v42, 0.0 }
 0x15c   :  { %266 = vst.msk [vmem:[#allocation14] sm:$0xf] %vm264_vm1, %v263_v43  ;;  %v268_v44 = vadd.f32 1e-05, %v263_v43 }
 0x15e   :  { %733 = vrsqrt.f32 %v268_v44 }
 0x168   :  { %v734_v46 = vpop.eup %733 }
 0x169   :  { %v270_v47 = vmul.f32 %v734_v46, %v267_v45 }
 0x16b   :  { %623 = vmatmul.mubr.msk.f32.vlgmr.msra.gmra.mrb[2].mxu0 %vm276_vm2, %v270_v47  ;;  %v272_v49 = vmul.f32 %v270_v47, %v259_v37 }
 0x16d   :  { %v273_v50 = vsub.f32 %v271_v48, %v272_v49 }
 0x16f   :  { %630 = vmatmul.mubr.msk.f32.vlgmr.msra.gmra.mrb[2].mxu1 %vm276_vm2, %v273_v50 }
 0x23e   :  { %v346_v51 = vpop.f32.mrb[2].mxu0 }
 0x23f   :  { %v624_v52 = vpop.f32.mrb[3].mxu0 }
 0x242   :  { %v419_v53 = vpop.f32.mrb[2].mxu1 }
 0x243   :  { %v631_v54 = vpop.f32.mrb[3].mxu1 }
 0x244 LB: > { %s507_s1 = sshll.u32 %s951_s4, 2  ;;  %s428_s4 = sadd.s32 1, %s951_s4   ;;  %s951_s4 = sphi %s949_s4, %s428_s4  }
 0x245   : > { %s430_s23 = scalar_lea.vmem [#allocation2], %s507_s1  ;;  %s434_s19 = scalar_lea.vmem [#allocation11], %s507_s1 }
 0x246   : > { %v431_v55 = vld [vmem:[%s430_s23] sm:$0xf]  ;;  %p425_p13 = scmp.ge.s32.totalorder %s428_s4, 2  }
 0x247   : > { %v432_v56 = vmul.f32 %v431_v55, %v346_v51  ;;  %s965_s21 = smov (%p425_p13), [#allocation12]   ;;  %s966_s24 = smov (%p425_p13), [#allocation11]  }
 0x248   :  { %427 = sbr.rel (!%p425_p13) target bundleno = 580 (0x244), region = 104  ;;  %s454_s22 = sshll.u32 (%p425_p13), %s965_s21, 4  ;;  %s455_s22 = int_to_ptr.vmem [resolvable:$true] %s454_s22 }
 0x249   : > { %v433_v57 = vadd.f32 %v432_v56, %v419_v53  ;;  %s441_s25 = sshll.u32 (%p425_p13), %s966_s24, 4  ;;  %s845_s26 = scalar_lea.vmem (%p425_p13), %s455_s22, 64  ;;  %s1096_s25 = int_to_ptr.vmem [resolvable:$true] %s441_s25 }
 0x24a   :  { %p846_p0 = scmp.ne.s32.totalorder (%p425_p13), %s455_s22, %s845_s26  ;;  %p850_p1 = scmp.lt.s32.totalorder (%p425_p13), %s455_s22, %s455_s22 }
 0x24b   : > { %435 = vst [vmem:[%s434_s19] sm:$0xf] %v433_v57  ;;  %p851_p2 = scmp.lt.s32.totalorder (%p425_p13), %s845_s26, %s845_s26 }
 0x24d   :  { %p852_p3 = por (%p425_p13), %p851_p2, %p850_p1 }
 0x24f   :  { %p853_p4 = pnand %p852_p3, %p846_p0 }
 0x251   :  { %856 = shalt.err (!%p853_p4)
}
 0x252   :  { %s857_s28 = scalar_lea.hbm %s1148_s6, 64 }
 0x253   :  { %p858_p5 = scmp.ne.s32.totalorder %s1148_s6, %s857_s28  ;;  %p861_p6 = scmp.lt.u32.totalorder %s857_s28, %s1148_s6 }
 0x255   :  { %p863_p7 = pnand %p861_p6, %p858_p5 }
 0x257   :  { %866 = shalt.err (!%p863_p7)
}
 0x258   :  { %457 = dma.vmem_to_hbm [thread:$0]  %s455_s22, 64, %s1148_s6, [#allocation13]  }
 0x259   :  { %s867_s13 = scalar_lea.vmem %s1096_s25, 128  ;;  %p872_p9 = scmp.lt.s32.totalorder %s1096_s25, %s1096_s25 }
 0x25a   :  { %p868_p8 = scmp.ne.s32.totalorder %s1096_s25, %s867_s13  ;;  %p873_p10 = scmp.lt.s32.totalorder %s867_s13, %s867_s13 }
 0x25c   :  { %p874_p11 = por %p873_p10, %p872_p9 }
 0x25e   :  { %p875_p12 = pnand %p874_p11, %p868_p8 }
 0x260   :  { %878 = shalt.err (!%p875_p12)
}
 0x261   :  { %s879_s2 = scalar_lea.hbm %s1147_s5, 128 }
 0x262   :  { %p880_p13 = scmp.ne.s32.totalorder %s1147_s5, %s879_s2  ;;  %p883_p0 = scmp.lt.u32.totalorder %s879_s2, %s1147_s5 }
 0x264   :  { %p885_p1 = pnand %p883_p0, %p880_p13 }
 0x266   :  { %888 = shalt.err (!%p885_p1)
}
 0x267   :  { %447 = dma.vmem_to_hbm [thread:$0]  %s1096_s25, 128, %s1147_s5, [#allocation4], %s958_s3, %s958_s3, %s959_s27  }
 0x268   :  { %s967_s1 = smov [#allocation14]  }
 0x269   :  { %s464_s23 = sshll.u32 %s967_s1, 4  ;;  %s465_s23 = int_to_ptr.vmem [resolvable:$true] %s464_s23 }
 0x26a   :  { %s889_s19 = scalar_lea.vmem %s465_s23, 64  ;;  %p894_p3 = scmp.lt.s32.totalorder %s465_s23, %s465_s23 }
 0x26b   :  { %p890_p2 = scmp.ne.s32.totalorder %s465_s23, %s889_s19  ;;  %p895_p4 = scmp.lt.s32.totalorder %s889_s19, %s889_s19 }
 0x26d   :  { %p896_p5 = por %p895_p4, %p894_p3 }
 0x26f   :  { %p897_p6 = pnand %p896_p5, %p890_p2 }
 0x271   :  { %900 = shalt.err (!%p897_p6)
}
 0x272   :  { %s901_s24 = scalar_lea.hbm %s1149_s7, 64 }
 0x273   :  { %p902_p7 = scmp.ne.s32.totalorder %s1149_s7, %s901_s24  ;;  %p905_p8 = scmp.lt.u32.totalorder %s901_s24, %s1149_s7 }
 0x275   :  { %p907_p9 = pnand %p905_p8, %p902_p7 }
 0x277   :  { %910 = shalt.err (!%p907_p9)
}
 0x278   :  { %467 = dma.vmem_to_hbm [thread:$0]  %s465_s23, 64, %s1149_s7, [#allocation13]  }
 0x279   :  { %933 = dma.done.wait [#allocation4], 128  }
 0x27a   :  { %934 = vsyncadd [#allocation4], 4294967168 }
 0x27b   :  { %935 = dma.done.wait [#allocation13], 128  }
 0x27c   :  { %936 = vsyncadd [#allocation13], 4294967168 }
 0x27d   :  { %477 = vsyncpa [#allocation3], 1 }
 0x27e   :  { %478 = vsyncpa [#allocation6], 1 }
 0x27f   :  { %479 = vsyncpa [#allocation9], 1 }
 0x280   :  { %480 = vsyncpa [#allocation4], 1 }
 0x281   :  { %481 = vsyncpa [#allocation13], 1 }

</bundles_post_ra>
